<compile_context>
chip_gen: v7x
topology: tpu7x:2x2x1
jax: 0.10.0
libtpu: 0.0.40
codegen_flags: <defaults>
</compile_context>

<pallas_src>
import jax
import jax.numpy as jnp
from jax.experimental import pallas as pl
from jax.experimental.pallas import tpu as pltpu

LANE = 128      # lane width (last-dim padding target)
TILE_N = 256    # node-row / reduction tile (MXU-native on v6e/v7x, 2x v5e MXU)


def _round_up(v, m):
    return ((v + m - 1) // m) * m


def _pad2(arr, rows, cols):
    r, c = arr.shape
    return jnp.pad(arr, ((0, rows - r), (0, cols - c)))


def rect_l_kernel(a_ref, x_ref, w1_ref, b1_ref, w2_ref, b2_ref, out_ref, acc_ref):
    k = pl.program_id(1)

    @pl.when(k == 0)
    def _():
        acc_ref[...] = jnp.zeros_like(acc_ref)

    # Reordered chain: A_hat @ (X @ W_gcn).  xw is the k-th row-block of X @ W_gcn.
    xw = jnp.dot(x_ref[...], w1_ref[...], preferred_element_type=jnp.float32)
    acc_ref[...] += jnp.dot(a_ref[...], xw.astype(jnp.bfloat16),
                            preferred_element_type=jnp.float32)

    @pl.when(k == pl.num_programs(1) - 1)
    def _():
        # GraphConv bias + ReLU (VPU work rides free under MXU cycles)
        h1 = jnp.maximum(acc_ref[...] + b1_ref[...], 0.0)
        # TODO(synk): dropout with p>0 in training mode would need pltpu.prng_seed /
        # prng_random_bits masking here; module default p=0.0 (eval) -> identity.
        preds = jnp.dot(h1.astype(jnp.bfloat16), w2_ref[...],
                        preferred_element_type=jnp.float32) + b2_ref[...]
        out_ref[...] = preds.astype(out_ref.dtype)


def rect_l_forward(a_hat, x, w_gcn, b_gcn, w_fc, b_fc):
    """a_hat: [N,N] normalized adjacency, x: [N,F_in], w_gcn: [F_in,H],
    b_gcn: [H], w_fc: [F_in,H] (PyTorch nn.Linear weight layout), b_fc: [F_in]."""
    N, F_in = x.shape
    H = w_gcn.shape[1]

    N_pad = _round_up(N, TILE_N)
    F_pad = _round_up(F_in, LANE)
    H_pad = _round_up(H, LANE)

    # bf16 MXU operands, f32 biases (accumulation stays f32 inside the kernel).
    a_p = _pad2(a_hat, N_pad, N_pad).astype(jnp.bfloat16)
    x_p = _pad2(x, N_pad, F_pad).astype(jnp.bfloat16)
    w1_p = _pad2(w_gcn, F_pad, H_pad).astype(jnp.bfloat16)
    b1_p = _pad2(b_gcn.reshape(1, -1), 1, H_pad).astype(jnp.float32)
    w2_p = _pad2(w_fc.T, H_pad, F_pad).astype(jnp.bfloat16)   # fc weight transposed
    b2_p = _pad2(b_fc.reshape(1, -1), 1, F_pad).astype(jnp.float32)

    grid = (N_pad // TILE_N, N_pad // TILE_N)
    ni, nk = grid

    flops = 2 * (ni * nk * TILE_N * F_pad * H_pad   # X @ W_gcn (per step)
                 + N_pad * N_pad * H_pad            # A_hat @ (X @ W_gcn)
                 + N_pad * H_pad * F_pad)           # fc
    bytes_accessed = (a_p.size * 2 + x_p.size * 2 * ni
                      + (w1_p.size + w2_p.size) * 2
                      + (b1_p.size + b2_p.size) * 4
                      + N_pad * F_pad * 4)

    out_padded = pl.pallas_call(
        rect_l_kernel,
        out_shape=jax.ShapeDtypeStruct((N_pad, F_pad), jnp.float32),
        grid_spec=pltpu.PrefetchScalarGridSpec(
            num_scalar_prefetch=0,
            grid=grid,
            in_specs=[
                pl.BlockSpec((TILE_N, TILE_N), lambda i, k: (i, k)),   # A_hat tile
                pl.BlockSpec((TILE_N, F_pad), lambda i, k: (k, 0)),    # X row-block
                pl.BlockSpec((F_pad, H_pad), lambda i, k: (0, 0)),     # W_gcn (resident)
                pl.BlockSpec((1, H_pad), lambda i, k: (0, 0)),         # b_gcn (resident)
                pl.BlockSpec((H_pad, F_pad), lambda i, k: (0, 0)),     # W_fc^T (resident)
                pl.BlockSpec((1, F_pad), lambda i, k: (0, 0)),         # b_fc (resident)
            ],
            out_specs=pl.BlockSpec((TILE_N, F_pad), lambda i, k: (i, 0)),
            scratch_shapes=[pltpu.VMEM((TILE_N, H_pad), jnp.float32)],
        ),
        compiler_params=pltpu.CompilerParams(
            dimension_semantics=("parallel", "arbitrary"),
            vmem_limit_bytes=32 * 1024 * 1024,
        ),
        cost_estimate=pl.CostEstimate(flops=flops, transcendentals=0,
                                      bytes_accessed=bytes_accessed),
    )(a_p, x_p, w1_p, b1_p, w2_p, b2_p)

    return out_padded[:N, :F_in]


def xavier_uniform(key, shape):
    fan_in, fan_out = shape[0], shape[1]
    limit = jnp.sqrt(6.0 / (fan_in + fan_out))
    return jax.random.uniform(key, shape, jnp.float32, -limit, limit)


def build_normalized_adjacency(key, n):
    # deterministic undirected graph with self-loops, DGL norm='both'
    dense = jax.random.uniform(key, (n, n), jnp.float32)
    adj = (dense + dense.T > 1.0).astype(jnp.float32)
    adj = jnp.maximum(adj, jnp.eye(n, dtype=jnp.float32))   # add self-loops
    deg = jnp.maximum(adj.sum(axis=1), 1.0)                 # clamp(min=1) like DGL
    norm = deg ** -0.5
    return norm[:, None] * adj * norm[None, :]


if __name__ == "__main__":
    N, F_IN, N_HIDDEN = 16, 32, 32

    key = jax.random.PRNGKey(0)
    k_adj, k_x, k_w1, k_w2, k_b2 = jax.random.split(key, 5)

    a_hat = build_normalized_adjacency(k_adj, N)
    x = jax.random.normal(k_x, (N, F_IN), jnp.float32)

    # GraphConv params: weight [F_in, H] xavier_uniform, bias zeros (DGL defaults)
    w_gcn = xavier_uniform(k_w1, (F_IN, N_HIDDEN))
    b_gcn = jnp.zeros((N_HIDDEN,), jnp.float32)

    # fc: nn.Linear(n_hidden, in_feats); weight [F_in, H] xavier_uniform (per module init),
    # bias uniform(-1/sqrt(fan_in), 1/sqrt(fan_in)) like PyTorch default.
    w_fc = xavier_uniform(k_w2, (F_IN, N_HIDDEN))
    bound = 1.0 / jnp.sqrt(jnp.float32(N_HIDDEN))
    b_fc = jax.random.uniform(k_b2, (F_IN,), jnp.float32, -bound, bound)

    preds = rect_l_forward(a_hat, x, w_gcn, b_gcn, w_fc, b_fc)
    jax.block_until_ready(preds)
    assert preds.shape == (N, F_IN)

    # bf16-matched reference (same numerics as the kernel)
    xw = jnp.dot(x.astype(jnp.bfloat16), w_gcn.astype(jnp.bfloat16),
                 preferred_element_type=jnp.float32)
    ax = jnp.dot(a_hat.astype(jnp.bfloat16), xw.astype(jnp.bfloat16),
                 preferred_element_type=jnp.float32)
    h1_ref = jnp.maximum(ax + b_gcn[None, :], 0.0)
    preds_ref = jnp.dot(h1_ref.astype(jnp.bfloat16), w_fc.T.astype(jnp.bfloat16),
                        preferred_element_type=jnp.float32) + b_fc[None, :]
    assert jnp.allclose(preds, preds_ref, atol=1e-2, rtol=1e-2)

    # loose sanity vs. the pure-f32 module semantics
    h1_f32 = jnp.maximum(a_hat @ (x @ w_gcn) + b_gcn[None, :], 0.0)
    preds_f32 = h1_f32 @ w_fc.T + b_fc[None, :]
    assert jnp.allclose(preds, preds_f32, atol=1e-1, rtol=1e-1)

    print("KERNEL_OK")
</pallas_src>

<mosaic_0001>
module attributes {stable_mosaic.version = 11 : i64} {
  func.func @rect_l_kernel(%arg0: i32, %arg1: i32, %arg2: memref<256x256xbf16, #tpu.memory_space<vmem>>, %arg3: memref<256x128xbf16, #tpu.memory_space<vmem>>, %arg4: memref<128x128xbf16, #tpu.memory_space<vmem>>, %arg5: memref<1x128xf32, #tpu.memory_space<vmem>>, %arg6: memref<128x128xbf16, #tpu.memory_space<vmem>>, %arg7: memref<1x128xf32, #tpu.memory_space<vmem>>, %arg8: memref<256x128xf32, #tpu.memory_space<vmem>>, %arg9: memref<256x128xf32, #tpu.memory_space<vmem>>) attributes {dimension_semantics = [#tpu.dimension_semantics<parallel>, #tpu.dimension_semantics<arbitrary>], iteration_bounds = array<i64: 1, 1>, scalar_prefetch = 0 : i64, scratch_operands = 1 : i64, tpu.core_type = #tpu.core_type<tc>, window_params = [{transform_indices = @transform_0, window_bounds = array<i64: 256, 256>}, {transform_indices = @transform_1, window_bounds = array<i64: 256, 128>}, {pipeline_mode = #tpu.pipeline_mode<synchronous>, transform_indices = @transform_2, window_bounds = array<i64: 128, 128>}, {pipeline_mode = #tpu.pipeline_mode<synchronous>, transform_indices = @transform_3, window_bounds = array<i64: 1, 128>}, {pipeline_mode = #tpu.pipeline_mode<synchronous>, transform_indices = @transform_4, window_bounds = array<i64: 128, 128>}, {pipeline_mode = #tpu.pipeline_mode<synchronous>, transform_indices = @transform_5, window_bounds = array<i64: 1, 128>}, {transform_indices = @transform_6, window_bounds = array<i64: 256, 128>}]} {
    %c0_i32 = arith.constant 0 : i32
    %0 = arith.cmpi eq, %arg1, %c0_i32 : i32
    %1 = arith.extui %0 : i1 to i32
    %c0_i32_0 = arith.constant 0 : i32
    %2 = arith.cmpi ne, %1, %c0_i32_0 : i32
    scf.if %2 {
      %cst_13 = arith.constant 0.000000e+00 : f32
      %15 = vector.broadcast %cst_13 : f32 to vector<256x128xf32>
      %c0_14 = arith.constant 0 : index
      %c0_15 = arith.constant 0 : index
      %16 = vector.load %arg9[%c0_14, %c0_15] : memref<256x128xf32, #tpu.memory_space<vmem>>, vector<256x128xf32>
      tpu.vector_store %arg9[%c0_14, %c0_15], %15 {strides = array<i32>} : memref<256x128xf32, #tpu.memory_space<vmem>>, vector<256x128xf32>,
    } else {
    }
    %c0 = arith.constant 0 : index
    %c0_1 = arith.constant 0 : index
    %3 = vector.load %arg3[%c0, %c0_1] : memref<256x128xbf16, #tpu.memory_space<vmem>>, vector<256x128xbf16>
    %c0_2 = arith.constant 0 : index
    %c0_3 = arith.constant 0 : index
    %4 = vector.load %arg4[%c0_2, %c0_3] : memref<128x128xbf16, #tpu.memory_space<vmem>>, vector<128x128xbf16>
    %cst = arith.constant dense<0.000000e+00> : vector<256x128xf32>
    %5 = tpu.matmul %3, %4, %cst {dimension_numbers = #tpu.dot_dimension_numbers<[1], [0], [0], [1], [0, 0, 1, 1], [], []>} : vector<256x128xbf16>, vector<128x128xbf16>, vector<256x128xf32> -> vector<256x128xf32>
    %c0_4 = arith.constant 0 : index
    %c0_5 = arith.constant 0 : index
    %6 = vector.load %arg9[%c0_4, %c0_5] : memref<256x128xf32, #tpu.memory_space<vmem>>, vector<256x128xf32>
    %c0_6 = arith.constant 0 : index
    %c0_7 = arith.constant 0 : index
    %7 = vector.load %arg2[%c0_6, %c0_7] : memref<256x256xbf16, #tpu.memory_space<vmem>>, vector<256x256xbf16>
    %8 = arith.truncf %5 : vector<256x128xf32> to vector<256x128xbf16>
    %cst_8 = arith.constant dense<0.000000e+00> : vector<256x128xf32>
    %9 = tpu.matmul %7, %8, %cst_8 {dimension_numbers = #tpu.dot_dimension_numbers<[1], [0], [0], [1], [0, 0, 1, 1], [], []>} : vector<256x256xbf16>, vector<256x128xbf16>, vector<256x128xf32> -> vector<256x128xf32>
    %10 = arith.addf %6, %9 : vector<256x128xf32>
    %c0_9 = arith.constant 0 : index
    %c0_10 = arith.constant 0 : index
    %11 = vector.load %arg9[%c0_9, %c0_10] : memref<256x128xf32, #tpu.memory_space<vmem>>, vector<256x128xf32>
    tpu.vector_store %arg9[%c0_9, %c0_10], %10 {strides = array<i32>} : memref<256x128xf32, #tpu.memory_space<vmem>>, vector<256x128xf32>,
    %c0_i32_11 = arith.constant 0 : i32
    %12 = arith.cmpi eq, %arg1, %c0_i32_11 : i32
    %13 = arith.extui %12 : i1 to i32
    %c0_i32_12 = arith.constant 0 : i32
    %14 = arith.cmpi ne, %13, %c0_i32_12 : i32
    scf.if %14 {
      %c0_13 = arith.constant 0 : index
      %c0_14 = arith.constant 0 : index
      %15 = vector.load %arg9[%c0_13, %c0_14] : memref<256x128xf32, #tpu.memory_space<vmem>>, vector<256x128xf32>
      %c0_15 = arith.constant 0 : index
      %c0_16 = arith.constant 0 : index
      %16 = vector.load %arg5[%c0_15, %c0_16] : memref<1x128xf32, #tpu.memory_space<vmem>>, vector<1x128xf32>
      %17 = vector.broadcast %16 : vector<1x128xf32> to vector<256x128xf32>
      %18 = arith.addf %15, %17 : vector<256x128xf32>
      %cst_17 = arith.constant 0.000000e+00 : f32
      %19 = vector.broadcast %cst_17 : f32 to vector<256x128xf32>
      %20 = arith.maximumf %18, %19 : vector<256x128xf32>
      %21 = arith.truncf %20 : vector<256x128xf32> to vector<256x128xbf16>
      %c0_18 = arith.constant 0 : index
      %c0_19 = arith.constant 0 : index
      %22 = vector.load %arg6[%c0_18, %c0_19] : memref<128x128xbf16, #tpu.memory_space<vmem>>, vector<128x128xbf16>
      %cst_20 = arith.constant dense<0.000000e+00> : vector<256x128xf32>
      %23 = tpu.matmul %21, %22, %cst_20 {dimension_numbers = #tpu.dot_dimension_numbers<[1], [0], [0], [1], [0, 0, 1, 1], [], []>} : vector<256x128xbf16>, vector<128x128xbf16>, vector<256x128xf32> -> vector<256x128xf32>
      %c0_21 = arith.constant 0 : index
      %c0_22 = arith.constant 0 : index
      %24 = vector.load %arg7[%c0_21, %c0_22] : memref<1x128xf32, #tpu.memory_space<vmem>>, vector<1x128xf32>
      %25 = vector.broadcast %24 : vector<1x128xf32> to vector<256x128xf32>
      %26 = arith.addf %23, %25 : vector<256x128xf32>
      %c0_23 = arith.constant 0 : index
      %c0_24 = arith.constant 0 : index
      %27 = vector.load %arg8[%c0_23, %c0_24] : memref<256x128xf32, #tpu.memory_space<vmem>>, vector<256x128xf32>
      tpu.vector_store %arg8[%c0_23, %c0_24], %26 {strides = array<i32>} : memref<256x128xf32, #tpu.memory_space<vmem>>, vector<256x128xf32>,
    } else {
    }
    return
  }
  func.func @transform_0(%arg0: i32, %arg1: i32) -> (i32, i32) {
    %c0_i32 = arith.constant 0 : i32
    return %arg0, %arg1 : i32, i32
  }
  func.func @transform_1(%arg0: i32, %arg1: i32) -> (i32, i32) {
    %c0_i32 = arith.constant 0 : i32
    %c0_i32_0 = arith.constant 0 : i32
    return %arg1, %c0_i32 : i32, i32
  }
  func.func @transform_2(%arg0: i32, %arg1: i32) -> (i32, i32) {
    %c0_i32 = arith.constant 0 : i32
    %c0_i32_0 = arith.constant 0 : i32
    %c0_i32_1 = arith.constant 0 : i32
    return %c0_i32, %c0_i32_0 : i32, i32
  }
  func.func @transform_3(%arg0: i32, %arg1: i32) -> (i32, i32) {
    %c0_i32 = arith.constant 0 : i32
    %c0_i32_0 = arith.constant 0 : i32
    %c0_i32_1 = arith.constant 0 : i32
    return %c0_i32, %c0_i32_0 : i32, i32
  }
  func.func @transform_4(%arg0: i32, %arg1: i32) -> (i32, i32) {
    %c0_i32 = arith.constant 0 : i32
    %c0_i32_0 = arith.constant 0 : i32
    %c0_i32_1 = arith.constant 0 : i32
    return %c0_i32, %c0_i32_0 : i32, i32
  }
  func.func @transform_5(%arg0: i32, %arg1: i32) -> (i32, i32) {
    %c0_i32 = arith.constant 0 : i32
    %c0_i32_0 = arith.constant 0 : i32
    %c0_i32_1 = arith.constant 0 : i32
    return %c0_i32, %c0_i32_0 : i32, i32
  }
  func.func @transform_6(%arg0: i32, %arg1: i32) -> (i32, i32) {
    %c0_i32 = arith.constant 0 : i32
    %c0_i32_0 = arith.constant 0 : i32
    return %arg0, %c0_i32 : i32, i32
  }
}

</mosaic_0001>

<bundles_post_ra>
// kernel: tpu_custom_call.1
= control target key start
LH: loop header
LB: loop body
LE: loop exit
PB: predicated region body
PF: predicated region fallthrough
CT: control target
= control target key end

     0   :  { %11 = vsyncpa [#allocation4], 0  ;;  %s2068_s0 = inlined_call_operand.hbm [shape: bf16[256,256], index: 0, kind: input, shape index: {}]   ;;  %s2069_s1 = inlined_call_operand.hbm [shape: bf16[256,128], index: 1, kind: input, shape index: {}]   ;;  %s2070_s2 = inlined_call_operand.hbm [shape: bf16[128,128], index: 2, kind: input, shape index: {}]   ;;  %s2071_s3 = inlined_call_operand.vmem [shape: f32[1,128], index: 3, kind: input, shape index: {}]   ;;  %s2072_s4 = inlined_call_operand.hbm [shape: bf16[128,128], index: 4, kind: input, shape index: {}]   ;;  %s2073_s5 = inlined_call_operand.vmem [shape: f32[1,128], index: 5, kind: input, shape index: {}]   ;;  %s2074_s6 = inlined_call_operand.hbm [shape: f32[256,128], index: 6, kind: output, shape index: {}]  }
   0x1   :  { %12 = vsyncpa [#allocation7], 0 }
   0x2   :  { %13 = vsyncpa [#allocation10], 0 }
   0x3   :  { %14 = vsyncpa [#allocation5], 0  ;;  %s1868_s21 = smov [#allocation6]   ;;  %s1750_s25 = scalar_lea.hbm %s2069_s1, 2048 }
   0x4   :  { %s32_s22 = sshll.u32 %s1868_s21, 4  ;;  %p1751_p0 = scmp.ne.s32.totalorder %s2069_s1, %s1750_s25  ;;  %s33_s22 = int_to_ptr.vmem [resolvable:$true] %s32_s22 }
   0x5   :  { %p1754_p1 = scmp.lt.u32.totalorder %s1750_s25, %s2069_s1 }
   0x7   :  { %p1756_p2 = pnand %p1754_p1, %p1751_p0 }
   0x9   :  { %1759 = shalt.err (!%p1756_p2)
}
   0xa   :  { %s1760_s30 = scalar_lea.vmem %s33_s22, 2048  ;;  %p1765_p4 = scmp.lt.s32.totalorder %s33_s22, %s33_s22 }
   0xb   :  { %p1761_p3 = scmp.ne.s32.totalorder %s33_s22, %s1760_s30  ;;  %p1766_p5 = scmp.lt.s32.totalorder %s1760_s30, %s1760_s30 }
   0xd   :  { %p1767_p6 = por %p1766_p5, %p1765_p4 }
   0xf   :  { %p1768_p7 = pnand %p1767_p6, %p1761_p3 }
  0x11   :  { %1771 = shalt.err (!%p1768_p7)
}
  0x12   :  { %s1869_s7 = smov 64   ;;  %s1870_s8 = smov 4  }
  0x13   :  { %38 = dma.hbm_to_vmem [thread:$0]  %s2069_s1, 2048, %s33_s22, [#allocation7], %s1869_s7, %s1869_s7, %s1870_s8  }
  0x14   :  { %s1871_s11 = smov [#allocation3]   ;;  %s1772_s15 = scalar_lea.hbm %s2068_s0, 4096 }
  0x15   :  { %s20_s12 = sshll.u32 %s1871_s11, 4  ;;  %p1773_p8 = scmp.ne.s32.totalorder %s2068_s0, %s1772_s15  ;;  %s21_s12 = int_to_ptr.vmem [resolvable:$true] %s20_s12 }
  0x16   :  { %p1776_p9 = scmp.lt.u32.totalorder %s1772_s15, %s2068_s0 }
  0x18   :  { %p1778_p10 = pnand %p1776_p9, %p1773_p8 }
  0x1a   :  { %1781 = shalt.err (!%p1778_p10)
}
  0x1b   :  { %s1782_s20 = scalar_lea.vmem %s21_s12, 4096  ;;  %p1787_p12 = scmp.lt.s32.totalorder %s21_s12, %s21_s12 }
  0x1c   :  { %p1783_p11 = scmp.ne.s32.totalorder %s21_s12, %s1782_s20  ;;  %p1788_p13 = scmp.lt.s32.totalorder %s1782_s20, %s1782_s20 }
  0x1e   :  { %p1789_p0 = por %p1788_p13, %p1787_p12 }
  0x20   :  { %p1790_p1 = pnand %p1789_p0, %p1783_p11 }
  0x22   :  { %1793 = shalt.err (!%p1790_p1)
}
  0x23   :  { %s1872_s1 = smov 128   ;;  %s1873_s21 = smov 8  }
  0x24   :  { %26 = dma.hbm_to_vmem [thread:$0]  %s2068_s0, 4096, %s21_s12, [#allocation4], %s1872_s1, %s1872_s1, %s1873_s21  }
  0x25   :  { %s1874_s24 = smov [#allocation8]   ;;  %s1875_s26 = smov [#allocation9]  }
  0x26   :  { %s44_s25 = sshll.u32 %s1874_s24, 4  ;;  %s58_s27 = sshll.u32 %s1875_s26, 4  ;;  %s45_s25 = int_to_ptr.vmem [resolvable:$true] %s44_s25  ;;  %s1942_s27 = int_to_ptr.vmem [resolvable:$true] %s58_s27 }
  0x27   :  { %s1794_s30 = scalar_lea.hbm %s2070_s2, 1024 }
  0x28   :  { %p1795_p2 = scmp.ne.s32.totalorder %s2070_s2, %s1794_s30  ;;  %p1798_p3 = scmp.lt.u32.totalorder %s1794_s30, %s2070_s2 }
  0x2a   :  { %p1800_p4 = pnand %p1798_p3, %p1795_p2 }
  0x2c   :  { %1803 = shalt.err (!%p1800_p4)
}
  0x2d   :  { %s1804_s0 = scalar_lea.vmem %s45_s25, 1024  ;;  %p1809_p6 = scmp.lt.s32.totalorder %s45_s25, %s45_s25 }
  0x2e   :  { %p1805_p5 = scmp.ne.s32.totalorder %s45_s25, %s1804_s0  ;;  %p1810_p7 = scmp.lt.s32.totalorder %s1804_s0, %s1804_s0 }
  0x30   :  { %p1811_p8 = por %p1810_p7, %p1809_p6 }
  0x32   :  { %p1812_p9 = pnand %p1811_p8, %p1805_p5 }
  0x34   :  { %1815 = shalt.err (!%p1812_p9)
}
  0x35   :  { %50 = dma.hbm_to_vmem [thread:$0]  %s2070_s2, 1024, %s45_s25, [#allocation7], %s1869_s7, %s1869_s7, %s1870_s8  }
  0x36   :  { %s1816_s17 = scalar_lea.hbm %s2072_s4, 1024 }
  0x37   :  { %p1817_p10 = scmp.ne.s32.totalorder %s2072_s4, %s1816_s17  ;;  %p1820_p11 = scmp.lt.u32.totalorder %s1816_s17, %s2072_s4 }
  0x39   :  { %p1822_p12 = pnand %p1820_p11, %p1817_p10 }
  0x3b   :  { %1825 = shalt.err (!%p1822_p12)
}
  0x3c   :  { %s1826_s23 = scalar_lea.vmem %s1942_s27, 1024  ;;  %p1831_p0 = scmp.lt.s32.totalorder %s1942_s27, %s1942_s27 }
  0x3d   :  { %p1827_p13 = scmp.ne.s32.totalorder %s1942_s27, %s1826_s23  ;;  %p1832_p1 = scmp.lt.s32.totalorder %s1826_s23, %s1826_s23 }
  0x3f   :  { %p1833_p2 = por %p1832_p1, %p1831_p0 }
  0x41   :  { %p1834_p3 = pnand %p1833_p2, %p1827_p13 }
  0x43   :  { %1837 = shalt.err (!%p1834_p3)
}
  0x44   :  { %64 = dma.hbm_to_vmem [thread:$0]  %s2072_s4, 1024, %s1942_s27, [#allocation10], %s1869_s7, %s1869_s7, %s1870_s8  }
  0x45   :  { %1860 = dma.done.wait [#allocation4], 4096  }
  0x46   :  { %1861 = vsyncadd [#allocation4], 4294963200 }
  0x47   :  { %1862 = dma.done.wait [#allocation7], 3072  }
  0x48   :  { %1863 = vsyncadd [#allocation7], 4294964224 }
  0x49   :  { %1864 = dma.done.wait [#allocation10], 1024  }
  0x4a   :  { %1865 = vsyncadd [#allocation10], 4294966272  ;;  %v1670_v0 = vld [vmem:[#allocation8] sm:$0xff]   ;;  %v1671_v1 = vld [vmem:[#allocation8 + $0x8] sm:$0xff]  }
  0x4b   :  { %1565 = vmatprep.subr.bf16.mxu0 %v1670_v0  ;;  %v1672_v2 = vld [vmem:[#allocation8 + $0x10] sm:$0xff]   ;;  %v1673_v3 = vld [vmem:[#allocation8 + $0x18] sm:$0xff]   ;;  %v1678_v4 = vld [vmem:[#allocation6] sm:$0xff]  }
  0x4c   :  { %1566 = vmatpush3.bf16.msra.mxu0 %v1670_v0  ;;  %1581 = vmatprep.mubr.bf16.mxu0 %v1678_v4  ;;  %v1674_v5 = vld [vmem:[#allocation8 + $0x20] sm:$0xff]   ;;  %v1675_v6 = vld [vmem:[#allocation8 + $0x28] sm:$0xff]   ;;  %v1676_v7 = vld [vmem:[#allocation8 + $0x30] sm:$0xff]  }
  0x4d   :  { %1567 = vmatprep.subr.bf16.mxu0 %v1671_v1  ;;  %v1677_v8 = vld [vmem:[#allocation8 + $0x38] sm:$0xff]   ;;  %v1679_v9 = vld [vmem:[#allocation6 + $0x8] sm:$0xff]   ;;  %v1680_v10 = vld [vmem:[#allocation6 + $0x10] sm:$0xff]  }
  0x4e   :  { %v1681_v11 = vld [vmem:[#allocation6 + $0x18] sm:$0xff]   ;;  %v1682_v12 = vld [vmem:[#allocation6 + $0x20] sm:$0xff]   ;;  %v1683_v13 = vld [vmem:[#allocation6 + $0x28] sm:$0xff]  }
  0x4f   :  { %v1684_v14 = vld [vmem:[#allocation6 + $0x30] sm:$0xff]   ;;  %v1685_v15 = vld [vmem:[#allocation6 + $0x38] sm:$0xff]   ;;  %v1686_v16 = vld [vmem:[#allocation6 + $0x40] sm:$0xff]  }
  0x50   :  { %1568 = vmatpush3.bf16.msra.mxu0 %v1671_v1  ;;  %v1687_v17 = vld [vmem:[#allocation6 + $0x48] sm:$0xff]   ;;  %v1688_v18 = vld [vmem:[#allocation6 + $0x50] sm:$0xff]   ;;  %v1689_v19 = vld [vmem:[#allocation6 + $0x58] sm:$0xff]  }
  0x51   :  { %1569 = vmatprep.subr.bf16.mxu0 %v1672_v2  ;;  %v1690_v20 = vld [vmem:[#allocation6 + $0x60] sm:$0xff]   ;;  %v1691_v21 = vld [vmem:[#allocation6 + $0x68] sm:$0xff]   ;;  %v1692_v22 = vld [vmem:[#allocation6 + $0x70] sm:$0xff]  }
  0x52   :  { %v1693_v23 = vld [vmem:[#allocation6 + $0x78] sm:$0xff]   ;;  %v1696_v24 = vld [vmem:[#allocation3 + $0x4] ss:$8 sps:$4 sm:$0xff]  }
  0x53   :  { %741 = vmatprep.mubr.bf16.mxu1 %v1696_v24  ;;  %v1714_v24 = vld [vmem:[#allocation3 + $0x60] ss:$8 sps:$4 sm:$0xff]  }
  0x54   :  { %1570 = vmatpush3.bf16.msra.mxu0 %v1672_v2 }
  0x55   :  { %1571 = vmatprep.subr.bf16.mxu0 %v1673_v3 }
  0x58   :  { %1572 = vmatpush3.bf16.msra.mxu0 %v1673_v3 }
  0x59   :  { %1573 = vmatprep.subr.bf16.mxu0 %v1674_v5 }
  0x5c   :  { %1574 = vmatpush3.bf16.msra.mxu0 %v1674_v5 }
  0x5d   :  { %1575 = vmatprep.subr.bf16.mxu0 %v1675_v6 }
  0x60   :  { %1576 = vmatpush3.bf16.msra.mxu0 %v1675_v6 }
  0x61   :  { %1577 = vmatprep.subr.bf16.mxu0 %v1676_v7 }
  0x64   :  { %1578 = vmatpush3.bf16.msra.mxu0 %v1676_v7 }
  0x65   :  { %1579 = vmatprep.subr.bf16.mxu0 %v1677_v8 }
  0x68   :  { %1580 = vmatpush3.bf16.msra.mxu0 %v1677_v8 }
  0x6b   :  { %1582 = vmatmul.mubr.bf16.vlgmr.msra.gmra.mrb[0].mxu0 %v1679_v9  ;;  %v1742_v9 = vld [vmem:[#allocation9] sm:$0xff]  }
  0x6c   :  { %1585 = vmatprep.mubr.bf16.mxu0 %v1680_v10  ;;  %v1743_v10 = vld [vmem:[#allocation9 + $0x8] sm:$0xff]   ;;  %1613 = vmatprep.subr.bf16.mxu0 %v1742_v9 }
  0x6d   :  { %1614 = vmatpush3.bf16.msra.mxu0 %v1742_v9 }
  0x6e   :  { %1615 = vmatprep.subr.bf16.mxu0 %v1743_v10 }
  0x71   :  { %1616 = vmatpush3.bf16.msra.mxu0 %v1743_v10 }
  0x73   :  { %1586 = vmatmul.mubr.bf16.gmra.mrb[4].mxu0 %v1681_v11  ;;  %v1694_v11 = vld [vmem:[#allocation3] ss:$8 sps:$4 sm:$0xff]  }
  0x74   :  { %1589 = vmatprep.mubr.bf16.mxu0 %v1682_v12  ;;  %v1744_v12 = vld [vmem:[#allocation9 + $0x10] sm:$0xff]  }
  0x75   :  { %1617 = vmatprep.subr.bf16.mxu0 %v1744_v12 }
  0x76   :  { %1618 = vmatpush3.bf16.msra.mxu0 %v1744_v12 }
  0x7b   :  { %1590 = vmatmul.mubr.bf16.gmra.mrb[8].mxu0 %v1683_v13  ;;  %v1697_v13 = vld [vmem:[#allocation3 + $0x14] ss:$8 sps:$4 sm:$0xff]  }
  0x7c   :  { %1593 = vmatprep.mubr.bf16.mxu0 %v1684_v14  ;;  %v1699_v14 = vld [vmem:[#allocation3 + $0x10] ss:$8 sps:$4 sm:$0xff]  }
  0x83   :  { %1594 = vmatmul.mubr.bf16.gmra.mrb[12].mxu0 %v1685_v15  ;;  %v1700_v15 = vld [vmem:[#allocation3 + $0x24] ss:$8 sps:$4 sm:$0xff]  }
  0x84   :  { %1597 = vmatprep.mubr.bf16.mxu0 %v1686_v16  ;;  %v1702_v16 = vld [vmem:[#allocation3 + $0x20] ss:$8 sps:$4 sm:$0xff]  }
  0x8b   :  { %1598 = vmatmul.mubr.bf16.gmra.mrb[16].mxu0 %v1687_v17  ;;  %v1703_v17 = vld [vmem:[#allocation3 + $0x34] ss:$8 sps:$4 sm:$0xff]  }
  0x8c   :  { %1601 = vmatprep.mubr.bf16.mxu0 %v1688_v18  ;;  %v1705_v18 = vld [vmem:[#allocation3 + $0x30] ss:$8 sps:$4 sm:$0xff]  }
  0x93   :  { %1602 = vmatmul.mubr.bf16.gmra.mrb[20].mxu0 %v1689_v19  ;;  %v1706_v19 = vld [vmem:[#allocation3 + $0x44] ss:$8 sps:$4 sm:$0xff]  }
  0x94   :  { %1605 = vmatprep.mubr.bf16.mxu0 %v1690_v20  ;;  %v1708_v20 = vld [vmem:[#allocation3 + $0x40] ss:$8 sps:$4 sm:$0xff]  }
  0x9b   :  { %1606 = vmatmul.mubr.bf16.gmra.mrb[24].mxu0 %v1691_v21  ;;  %v1709_v21 = vld [vmem:[#allocation3 + $0x54] ss:$8 sps:$4 sm:$0xff]  }
  0x9c   :  { %1609 = vmatprep.mubr.bf16.mxu0 %v1692_v22  ;;  %v1711_v22 = vld [vmem:[#allocation3 + $0x50] ss:$8 sps:$4 sm:$0xff]  }
  0xa3   :  { %1610 = vmatmul.mubr.bf16.gmra.mrb[28].mxu0 %v1693_v23  ;;  %v1712_v23 = vld [vmem:[#allocation3 + $0x64] ss:$8 sps:$4 sm:$0xff]  }
 0x13e   :  { %v1583_v25 = vpop.f32.mrb[0].mxu0 }
 0x13f   :  { %v342_v26 = vpop.f32.mrb[1].mxu0 }
 0x140   :  { %v1584_v27 = vpop.f32.mrb[2].mxu0 }
 0x141   :  { %v534_v28 = vpack.c.bf16 %v1584_v27, %v1583_v25  ;;  %v345_v29 = vpop.f32.mrb[3].mxu0  ;;  %v1715_v25 = vld [vmem:[#allocation3 + $0x74] ss:$8 sps:$4 sm:$0xff]   ;;  %v1718_v27 = vld [vmem:[#allocation3 + $0x84] ss:$8 sps:$4 sm:$0xff]  }
 0x142   :  { %v533_v30 = vpack.c.bf16 %v345_v29, %v342_v26  ;;  %v1717_v26 = vld [vmem:[#allocation3 + $0x70] ss:$8 sps:$4 sm:$0xff]   ;;  %v1721_v29 = vld [vmem:[#allocation3 + $0x94] ss:$8 sps:$4 sm:$0xff]  }
 0x146   :  { %v1587_v31 = vpop.f32.mrb[4].mxu0 }
 0x147   :  { %v358_v32 = vpop.f32.mrb[5].mxu0 }
 0x148   :  { %v1588_v33 = vpop.f32.mrb[6].mxu0 }
 0x149   :  { %v536_v34 = vpack.c.bf16 %v1588_v33, %v1587_v31  ;;  %v361_v35 = vpop.f32.mrb[7].mxu0  ;;  %v1724_v31 = vld [vmem:[#allocation3 + $0xa4] ss:$8 sps:$4 sm:$0xff]   ;;  %v1727_v33 = vld [vmem:[#allocation3 + $0xb4] ss:$8 sps:$4 sm:$0xff]  }
 0x14a   :  { %v535_v36 = vpack.c.bf16 %v361_v35, %v358_v32  ;;  %v1726_v32 = vld [vmem:[#allocation3 + $0xa0] ss:$8 sps:$4 sm:$0xff]   ;;  %v1729_v35 = vld [vmem:[#allocation3 + $0xb0] ss:$8 sps:$4 sm:$0xff]  }
 0x14e   :  { %v1591_v37 = vpop.f32.mrb[8].mxu0 }
 0x14f   :  { %v374_v38 = vpop.f32.mrb[9].mxu0 }
 0x150   :  { %v1592_v39 = vpop.f32.mrb[10].mxu0 }
 0x151   :  { %v538_v40 = vpack.c.bf16 %v1592_v39, %v1591_v37  ;;  %v377_v41 = vpop.f32.mrb[11].mxu0  ;;  %v1746_v37 = vld [vmem:[#allocation9 + $0x20] sm:$0xff]  }
 0x152   :  { %v537_v42 = vpack.c.bf16 %v377_v41, %v374_v38  ;;  %v1747_v38 = vld [vmem:[#allocation9 + $0x28] sm:$0xff]   ;;  %v1748_v41 = vld [vmem:[#allocation9 + $0x30] sm:$0xff]  }
 0x153   :  { %v1732_v39 = vld [vmem:[#allocation3 + $0xc0] ss:$8 sps:$4 sm:$0xff]  }
 0x156   :  { %v1595_v43 = vpop.f32.mrb[12].mxu0 }
 0x157   :  { %v390_v44 = vpop.f32.mrb[13].mxu0 }
 0x158   :  { %v1596_v45 = vpop.f32.mrb[14].mxu0 }
 0x159   :  { %v540_v46 = vpack.c.bf16 %v1596_v45, %v1595_v43  ;;  %v393_v47 = vpop.f32.mrb[15].mxu0  ;;  %v1735_v43 = vld [vmem:[#allocation3 + $0xd0] ss:$8 sps:$4 sm:$0xff]   ;;  %v1738_v45 = vld [vmem:[#allocation3 + $0xe0] ss:$8 sps:$4 sm:$0xff]  }
 0x15a   :  { %v539_v48 = vpack.c.bf16 %v393_v47, %v390_v44  ;;  %v1736_v44 = vld [vmem:[#allocation3 + $0xe4] ss:$8 sps:$4 sm:$0xff]   ;;  %v1741_v47 = vld [vmem:[#allocation3 + $0xf0] ss:$8 sps:$4 sm:$0xff]  }
 0x15e   :  { %v1599_v49 = vpop.f32.mrb[16].mxu0 }
 0x15f   :  { %v406_v50 = vpop.f32.mrb[17].mxu0 }
 0x160   :  { %v1600_v51 = vpop.f32.mrb[18].mxu0 }
 0x161   :  { %v542_v52 = vpack.c.bf16 %v1600_v51, %v1599_v49  ;;  %v409_v53 = vpop.f32.mrb[19].mxu0 }
 0x162   :  { %v541_v54 = vpack.c.bf16 %v409_v53, %v406_v50  ;;  %v1982_v50 = vld [vmem:[%s2071_s3] ss:$0 sm:$0xff] }
 0x164   :  { %1429 = vmatprep.subr.bf16.mxu1 %v541_v54 }
 0x165   :  { %1430 = vmatpush3.bf16.msra.mxu1 %v533_v30  ;;  %v1723_v30 = vld [vmem:[#allocation3 + $0x90] ss:$8 sps:$4 sm:$0xff]  }
 0x166   :  { %v1603_v55 = vpop.f32.mrb[20].mxu0  ;;  %1431 = vmatprep.subr.bf16.mxu1 %v542_v52 }
 0x167   :  { %v422_v56 = vpop.f32.mrb[21].mxu0 }
 0x168   :  { %v1604_v57 = vpop.f32.mrb[22].mxu0 }
 0x169   :  { %v544_v58 = vpack.c.bf16 %v1604_v57, %v1603_v55  ;;  %v425_v59 = vpop.f32.mrb[23].mxu0  ;;  %1432 = vmatpush3.bf16.msra.mxu1 %v534_v28  ;;  %v1720_v28 = vld [vmem:[#allocation3 + $0x80] ss:$8 sps:$4 sm:$0xff]  }
 0x16a   :  { %v543_v60 = vpack.c.bf16 %v425_v59, %v422_v56 }
 0x16c   :  { %1433 = vmatprep.subr.bf16.mxu1 %v543_v60 }
 0x16d   :  { %1434 = vmatpush3.bf16.msra.mxu1 %v535_v36  ;;  %v1730_v36 = vld [vmem:[#allocation3 + $0xc4] ss:$8 sps:$4 sm:$0xff]  }
 0x16e   :  { %v1607_v61 = vpop.f32.mrb[24].mxu0  ;;  %1435 = vmatprep.subr.bf16.mxu1 %v544_v58 }
 0x16f   :  { %v438_v62 = vpop.f32.mrb[25].mxu0 }
 0x170   :  { %v1608_v63 = vpop.f32.mrb[26].mxu0 }
 0x171   :  { %v546_v0 = vpack.c.bf16 %v1608_v63, %v1607_v61  ;;  %v441_v1 = vpop.f32.mrb[27].mxu0  ;;  %1436 = vmatpush3.bf16.msra.mxu1 %v536_v34  ;;  %v1745_v34 = vld [vmem:[#allocation9 + $0x18] sm:$0xff]  }
 0x172   :  { %v545_v2 = vpack.c.bf16 %v441_v1, %v438_v62  ;;  %1619 = vmatprep.subr.bf16.mxu0 %v1745_v34 }
 0x173   :  { %1620 = vmatpush3.bf16.msra.mxu0 %v1745_v34 }
 0x174   :  { %1437 = vmatprep.subr.bf16.mxu1 %v545_v2  ;;  %1621 = vmatprep.subr.bf16.mxu0 %v1746_v37 }
 0x175   :  { %1438 = vmatpush3.bf16.msra.mxu1 %v537_v42  ;;  %v1749_v42 = vld [vmem:[#allocation9 + $0x38] sm:$0xff]  }
 0x176   :  { %v1611_v3 = vpop.f32.mrb[28].mxu0  ;;  %1439 = vmatprep.subr.bf16.mxu1 %v546_v0 }
 0x177   :  { %v454_v4 = vpop.f32.mrb[29].mxu0  ;;  %1622 = vmatpush3.bf16.msra.mxu0 %v1746_v37 }
 0x178   :  { %v1612_v5 = vpop.f32.mrb[30].mxu0  ;;  %1623 = vmatprep.subr.bf16.mxu0 %v1747_v38 }
 0x179   :  { %v548_v6 = vpack.c.bf16 %v1612_v5, %v1611_v3  ;;  %v457_v7 = vpop.f32.mrb[31].mxu0  ;;  %1440 = vmatpush3.bf16.msra.mxu1 %v538_v40  ;;  %v1733_v40 = vld [vmem:[#allocation3 + $0xd4] ss:$8 sps:$4 sm:$0xff]  }
 0x17a   :  { %v547_v8 = vpack.c.bf16 %v457_v7, %v454_v4 }
 0x17b   :  { %1624 = vmatpush3.bf16.msra.mxu0 %v1747_v38 }
 0x17c   :  { %1441 = vmatprep.subr.bf16.mxu1 %v547_v8  ;;  %1625 = vmatprep.subr.bf16.mxu0 %v1748_v41 }
 0x17d   :  { %1442 = vmatpush3.bf16.msra.mxu1 %v539_v48 }
 0x17e   :  { %1443 = vmatprep.subr.bf16.mxu1 %v548_v6 }
 0x17f   :  { %1626 = vmatpush3.bf16.msra.mxu0 %v1748_v41 }
 0x180   :  { %1627 = vmatprep.subr.bf16.mxu0 %v1749_v42 }
 0x181   :  { %1444 = vmatpush3.bf16.msra.mxu1 %v540_v46  ;;  %v1739_v46 = vld [vmem:[#allocation3 + $0xf4] ss:$8 sps:$4 sm:$0xff]  }
 0x183   :  { %1628 = vmatpush3.bf16.msra.mxu0 %v1749_v42 }
 0x184   :  { %742 = vmatmul.mubr.bf16.vlgmr.msra.gmra.mrb[0].mxu1 %v1694_v11 }
 0x185   :  { %749 = vmatprep.mubr.bf16.mxu1 %v1697_v13 }
 0x18c   :  { %750 = vmatmul.mubr.bf16.gmra.mrb[4].mxu1 %v1699_v14 }
 0x18d   :  { %757 = vmatprep.mubr.bf16.mxu1 %v1700_v15 }
 0x194   :  { %758 = vmatmul.mubr.bf16.gmra.mrb[8].mxu1 %v1702_v16 }
 0x195   :  { %765 = vmatprep.mubr.bf16.mxu1 %v1703_v17 }
 0x19c   :  { %766 = vmatmul.mubr.bf16.gmra.mrb[12].mxu1 %v1705_v18 }
 0x19d   :  { %773 = vmatprep.mubr.bf16.mxu1 %v1706_v19 }
 0x1a4   :  { %774 = vmatmul.mubr.bf16.gmra.mrb[16].mxu1 %v1708_v20 }
 0x1a5   :  { %781 = vmatprep.mubr.bf16.mxu1 %v1709_v21 }
 0x1ac   :  { %782 = vmatmul.mubr.bf16.gmra.mrb[20].mxu1 %v1711_v22 }
 0x1ad   :  { %789 = vmatprep.mubr.bf16.mxu1 %v1712_v23 }
 0x1b4   :  { %790 = vmatmul.mubr.bf16.gmra.mrb[24].mxu1 %v1714_v24 }
 0x1b5   :  { %797 = vmatprep.mubr.bf16.mxu1 %v1715_v25 }
 0x1bc   :  { %798 = vmatmul.mubr.bf16.gmra.mrb[28].mxu1 %v1717_v26 }
 0x1bd   :  { %805 = vmatprep.mubr.bf16.mxu1 %v1718_v27 }
 0x1c4   :  { %806 = vmatmul.mubr.bf16.gmra.mrb[32].mxu1 %v1720_v28 }
 0x1c5   :  { %813 = vmatprep.mubr.bf16.mxu1 %v1721_v29 }
 0x1cc   :  { %814 = vmatmul.mubr.bf16.gmra.mrb[36].mxu1 %v1723_v30 }
 0x1cd   :  { %821 = vmatprep.mubr.bf16.mxu1 %v1724_v31 }
 0x1d4   :  { %822 = vmatmul.mubr.bf16.gmra.mrb[40].mxu1 %v1726_v32 }
 0x1d5   :  { %829 = vmatprep.mubr.bf16.mxu1 %v1727_v33 }
 0x1dc   :  { %830 = vmatmul.mubr.bf16.gmra.mrb[44].mxu1 %v1729_v35 }
 0x1dd   :  { %837 = vmatprep.mubr.bf16.mxu1 %v1730_v36 }
 0x1e4   :  { %838 = vmatmul.mubr.bf16.gmra.mrb[48].mxu1 %v1732_v39 }
 0x1e5   :  { %845 = vmatprep.mubr.bf16.mxu1 %v1733_v40 }
 0x1ec   :  { %846 = vmatmul.mubr.bf16.gmra.mrb[52].mxu1 %v1735_v43 }
 0x1ed   :  { %853 = vmatprep.mubr.bf16.mxu1 %v1736_v44 }
 0x1f4   :  { %854 = vmatmul.mubr.bf16.gmra.mrb[56].mxu1 %v1738_v45 }
 0x1f5   :  { %861 = vmatprep.mubr.bf16.mxu1 %v1739_v46 }
 0x1fc   :  { %862 = vmatmul.mubr.bf16.gmra.mrb[60].mxu1 %v1741_v47 }
 0x257   :  { %v1445_v48 = vpop.f32.mrb[0].mxu1 }
 0x258   :  { %v1446_v49 = vpop.f32.mrb[1].mxu1 }
 0x259   :  { %v1447_v51 = vadd.f32 %v1446_v49, %v1445_v48  ;;  %v1448_v52 = vpop.f32.mrb[2].mxu1 }
 0x25a   :  { %v1449_v53 = vpop.f32.mrb[3].mxu1 }
 0x25b   :  { %v976_v54 = vadd.f32 %v1447_v51, %v1982_v50  ;;  %v1450_v55 = vadd.f32 %v1449_v53, %v1448_v52 }
 0x25d   :  { %v977_v56 = vadd.f32 %v1450_v55, %v1982_v50  ;;  %v1008_v57 = vmax.f32 %v976_v54, 0.0 }
 0x25f   :  { %v1009_v58 = vmax.f32 %v977_v56, 0.0  ;;  %v1451_v59 = vpop.f32.mrb[4].mxu1 }
 0x260   :  { %v1452_v60 = vpop.f32.mrb[5].mxu1 }
 0x261   :  { %v1453_v61 = vadd.f32 %v1452_v60, %v1451_v59  ;;  %v1454_v62 = vpop.f32.mrb[6].mxu1  ;;  %v1040_v63 = vpack.c.bf16 %v1009_v58, %v1008_v57 }
 0x262   :  { %v1455_v0 = vpop.f32.mrb[7].mxu1 }
 0x263   :  { %v978_v1 = vadd.f32 %v1453_v61, %v1982_v50  ;;  %v1456_v2 = vadd.f32 %v1455_v0, %v1454_v62  ;;  %1629 = vmatprep.mubr.bf16.mxu0 %v1040_v63 }
 0x265   :  { %v979_v3 = vadd.f32 %v1456_v2, %v1982_v50  ;;  %v1010_v4 = vmax.f32 %v978_v1, 0.0 }
 0x267   :  { %v1011_v5 = vmax.f32 %v979_v3, 0.0  ;;  %v1457_v6 = vpop.f32.mrb[8].mxu1 }
 0x268   :  { %v1458_v7 = vpop.f32.mrb[9].mxu1 }
 0x269   :  { %v1041_v8 = vpack.c.bf16 %v1011_v5, %v1010_v4  ;;  %v1459_v9 = vadd.f32 %v1458_v7, %v1457_v6  ;;  %v1460_v10 = vpop.f32.mrb[10].mxu1 }
 0x26a   :  { %v1461_v11 = vpop.f32.mrb[11].mxu1 }
 0x26b   :  { %v980_v12 = vadd.f32 %v1459_v9, %v1982_v50  ;;  %v1462_v13 = vadd.f32 %v1461_v11, %v1460_v10  ;;  %1630 = vmatmul.mubr.bf16.vlgmr.msra.gmra.mrb[32].mxu0 %v1041_v8 }
 0x26d   :  { %v981_v14 = vadd.f32 %v1462_v13, %v1982_v50  ;;  %v1012_v15 = vmax.f32 %v980_v12, 0.0 }
 0x26f   :  { %v1013_v16 = vmax.f32 %v981_v14, 0.0  ;;  %v1463_v17 = vpop.f32.mrb[12].mxu1 }
 0x270   :  { %v1464_v18 = vpop.f32.mrb[13].mxu1 }
 0x271   :  { %v1465_v19 = vadd.f32 %v1464_v18, %v1463_v17  ;;  %v1466_v20 = vpop.f32.mrb[14].mxu1  ;;  %v1042_v21 = vpack.c.bf16 %v1013_v16, %v1012_v15 }
 0x272   :  { %v1467_v22 = vpop.f32.mrb[15].mxu1 }
 0x273   :  { %v982_v23 = vadd.f32 %v1465_v19, %v1982_v50  ;;  %v1468_v24 = vadd.f32 %v1467_v22, %v1466_v20  ;;  %1633 = vmatprep.mubr.bf16.mxu0 %v1042_v21 }
 0x275   :  { %v983_v25 = vadd.f32 %v1468_v24, %v1982_v50  ;;  %v1014_v26 = vmax.f32 %v982_v23, 0.0 }
 0x277   :  { %v1015_v27 = vmax.f32 %v983_v25, 0.0  ;;  %v1469_v28 = vpop.f32.mrb[16].mxu1 }
 0x278   :  { %v1470_v29 = vpop.f32.mrb[17].mxu1 }
 0x279   :  { %v1471_v30 = vadd.f32 %v1470_v29, %v1469_v28  ;;  %v1472_v31 = vpop.f32.mrb[18].mxu1  ;;  %v1043_v32 = vpack.c.bf16 %v1015_v27, %v1014_v26 }
 0x27a   :  { %v1473_v33 = vpop.f32.mrb[19].mxu1 }
 0x27b   :  { %v984_v34 = vadd.f32 %v1471_v30, %v1982_v50  ;;  %v1474_v35 = vadd.f32 %v1473_v33, %v1472_v31  ;;  %1634 = vmatmul.mubr.bf16.gmra.mrb[36].mxu0 %v1043_v32 }
 0x27d   :  { %v985_v36 = vadd.f32 %v1474_v35, %v1982_v50  ;;  %v1016_v37 = vmax.f32 %v984_v34, 0.0 }
 0x27f   :  { %v1017_v38 = vmax.f32 %v985_v36, 0.0  ;;  %v1475_v39 = vpop.f32.mrb[20].mxu1 }
 0x280   :  { %v1476_v40 = vpop.f32.mrb[21].mxu1 }
 0x281   :  { %v1477_v41 = vadd.f32 %v1476_v40, %v1475_v39  ;;  %v1478_v42 = vpop.f32.mrb[22].mxu1  ;;  %v1044_v43 = vpack.c.bf16 %v1017_v38, %v1016_v37 }
 0x282   :  { %v1479_v44 = vpop.f32.mrb[23].mxu1 }
 0x283   :  { %v986_v45 = vadd.f32 %v1477_v41, %v1982_v50  ;;  %v1480_v46 = vadd.f32 %v1479_v44, %v1478_v42  ;;  %1637 = vmatprep.mubr.bf16.mxu0 %v1044_v43 }
 0x285   :  { %v987_v47 = vadd.f32 %v1480_v46, %v1982_v50  ;;  %v1018_v48 = vmax.f32 %v986_v45, 0.0 }
 0x287   :  { %v1019_v49 = vmax.f32 %v987_v47, 0.0  ;;  %v1481_v51 = vpop.f32.mrb[24].mxu1 }
 0x288   :  { %v1482_v52 = vpop.f32.mrb[25].mxu1 }
 0x289   :  { %v1483_v53 = vadd.f32 %v1482_v52, %v1481_v51  ;;  %v1484_v54 = vpop.f32.mrb[26].mxu1  ;;  %v1045_v55 = vpack.c.bf16 %v1019_v49, %v1018_v48 }
 0x28a   :  { %v1485_v56 = vpop.f32.mrb[27].mxu1 }
 0x28b   :  { %v988_v57 = vadd.f32 %v1483_v53, %v1982_v50  ;;  %v1486_v58 = vadd.f32 %v1485_v56, %v1484_v54  ;;  %1638 = vmatmul.mubr.bf16.gmra.mrb[40].mxu0 %v1045_v55 }
 0x28d   :  { %v989_v59 = vadd.f32 %v1486_v58, %v1982_v50  ;;  %v1020_v60 = vmax.f32 %v988_v57, 0.0 }
 0x28f   :  { %v1021_v61 = vmax.f32 %v989_v59, 0.0  ;;  %v1487_v62 = vpop.f32.mrb[28].mxu1 }
 0x290   :  { %v1488_v63 = vpop.f32.mrb[29].mxu1 }
 0x291   :  { %v1489_v0 = vadd.f32 %v1488_v63, %v1487_v62  ;;  %v1490_v1 = vpop.f32.mrb[30].mxu1  ;;  %v1046_v2 = vpack.c.bf16 %v1021_v61, %v1020_v60 }
 0x292   :  { %v1491_v3 = vpop.f32.mrb[31].mxu1 }
 0x293   :  { %v990_v4 = vadd.f32 %v1489_v0, %v1982_v50  ;;  %v1492_v5 = vadd.f32 %v1491_v3, %v1490_v1  ;;  %1641 = vmatprep.mubr.bf16.mxu0 %v1046_v2 }
 0x295   :  { %v991_v6 = vadd.f32 %v1492_v5, %v1982_v50  ;;  %v1022_v7 = vmax.f32 %v990_v4, 0.0 }
 0x297   :  { %v1023_v8 = vmax.f32 %v991_v6, 0.0  ;;  %v1493_v9 = vpop.f32.mrb[32].mxu1 }
 0x298   :  { %v1494_v10 = vpop.f32.mrb[33].mxu1 }
 0x299   :  { %v1495_v11 = vadd.f32 %v1494_v10, %v1493_v9  ;;  %v1496_v12 = vpop.f32.mrb[34].mxu1  ;;  %v1047_v13 = vpack.c.bf16 %v1023_v8, %v1022_v7 }
 0x29a   :  { %v1497_v14 = vpop.f32.mrb[35].mxu1 }
 0x29b   :  { %v992_v15 = vadd.f32 %v1495_v11, %v1982_v50  ;;  %v1498_v16 = vadd.f32 %v1497_v14, %v1496_v12  ;;  %1642 = vmatmul.mubr.bf16.gmra.mrb[44].mxu0 %v1047_v13 }
 0x29d   :  { %v993_v17 = vadd.f32 %v1498_v16, %v1982_v50  ;;  %v1024_v18 = vmax.f32 %v992_v15, 0.0 }
 0x29f   :  { %v1025_v19 = vmax.f32 %v993_v17, 0.0  ;;  %v1499_v20 = vpop.f32.mrb[36].mxu1 }
 0x2a0   :  { %v1500_v21 = vpop.f32.mrb[37].mxu1 }
 0x2a1   :  { %v1501_v22 = vadd.f32 %v1500_v21, %v1499_v20  ;;  %v1502_v23 = vpop.f32.mrb[38].mxu1  ;;  %v1048_v24 = vpack.c.bf16 %v1025_v19, %v1024_v18 }
 0x2a2   :  { %v1503_v25 = vpop.f32.mrb[39].mxu1 }
 0x2a3   :  { %v994_v26 = vadd.f32 %v1501_v22, %v1982_v50  ;;  %v1504_v27 = vadd.f32 %v1503_v25, %v1502_v23  ;;  %1645 = vmatprep.mubr.bf16.mxu0 %v1048_v24 }
 0x2a5   :  { %v995_v28 = vadd.f32 %v1504_v27, %v1982_v50  ;;  %v1026_v29 = vmax.f32 %v994_v26, 0.0 }
 0x2a7   :  { %v1027_v30 = vmax.f32 %v995_v28, 0.0  ;;  %v1505_v31 = vpop.f32.mrb[40].mxu1 }
 0x2a8   :  { %v1506_v32 = vpop.f32.mrb[41].mxu1 }
 0x2a9   :  { %v1507_v33 = vadd.f32 %v1506_v32, %v1505_v31  ;;  %v1508_v34 = vpop.f32.mrb[42].mxu1  ;;  %v1049_v35 = vpack.c.bf16 %v1027_v30, %v1026_v29 }
 0x2aa   :  { %v1509_v36 = vpop.f32.mrb[43].mxu1 }
 0x2ab   :  { %v996_v37 = vadd.f32 %v1507_v33, %v1982_v50  ;;  %v1510_v38 = vadd.f32 %v1509_v36, %v1508_v34  ;;  %1646 = vmatmul.mubr.bf16.gmra.mrb[48].mxu0 %v1049_v35  ;;  %v2019_v35 = vld [vmem:[%s2073_s5] ss:$0 sm:$0xff]  ;;  %s1876_s5 = smov [#allocation11]  }
 0x2ac   :  { %s1325_s25 = sshll.u32 %s1876_s5, 4  ;;  %s1326_s25 = int_to_ptr.vmem [resolvable:$true] %s1325_s25 }
 0x2ad   :  { %v997_v39 = vadd.f32 %v1510_v38, %v1982_v50  ;;  %v1028_v40 = vmax.f32 %v996_v37, 0.0  ;;  %s1838_s26 = scalar_lea.vmem %s1326_s25, 4096  ;;  %p1843_p5 = scmp.lt.s32.totalorder %s1326_s25, %s1326_s25 }
 0x2ae   :  { %p1839_p4 = scmp.ne.s32.totalorder %s1326_s25, %s1838_s26  ;;  %p1844_p6 = scmp.lt.s32.totalorder %s1838_s26, %s1838_s26 }
 0x2af   :  { %v1029_v41 = vmax.f32 %v997_v39, 0.0  ;;  %v1511_v42 = vpop.f32.mrb[44].mxu1 }
 0x2b0   :  { %v1512_v43 = vpop.f32.mrb[45].mxu1  ;;  %p1845_p7 = por %p1844_p6, %p1843_p5 }
 0x2b1   :  { %v1513_v44 = vadd.f32 %v1512_v43, %v1511_v42  ;;  %v1514_v45 = vpop.f32.mrb[46].mxu1  ;;  %v1050_v46 = vpack.c.bf16 %v1029_v41, %v1028_v40 }
 0x2b2   :  { %v1515_v47 = vpop.f32.mrb[47].mxu1  ;;  %p1846_p8 = pnand %p1845_p7, %p1839_p4 }
 0x2b3   :  { %v998_v48 = vadd.f32 %v1513_v44, %v1982_v50  ;;  %v1516_v49 = vadd.f32 %v1515_v47, %v1514_v45  ;;  %1649 = vmatprep.mubr.bf16.mxu0 %v1050_v46 }
 0x2b5   :  { %v999_v51 = vadd.f32 %v1516_v49, %v1982_v50  ;;  %v1030_v52 = vmax.f32 %v998_v48, 0.0 }
 0x2b7   :  { %v1031_v53 = vmax.f32 %v999_v51, 0.0  ;;  %v1517_v54 = vpop.f32.mrb[48].mxu1 }
 0x2b8   :  { %v1518_v55 = vpop.f32.mrb[49].mxu1 }
 0x2b9   :  { %v1519_v56 = vadd.f32 %v1518_v55, %v1517_v54  ;;  %v1520_v57 = vpop.f32.mrb[50].mxu1  ;;  %v1051_v58 = vpack.c.bf16 %v1031_v53, %v1030_v52 }
 0x2ba   :  { %v1521_v59 = vpop.f32.mrb[51].mxu1 }
 0x2bb   :  { %v1000_v60 = vadd.f32 %v1519_v56, %v1982_v50  ;;  %v1522_v61 = vadd.f32 %v1521_v59, %v1520_v57  ;;  %1650 = vmatmul.mubr.bf16.gmra.mrb[52].mxu0 %v1051_v58 }
 0x2bd   :  { %v1001_v62 = vadd.f32 %v1522_v61, %v1982_v50  ;;  %v1032_v63 = vmax.f32 %v1000_v60, 0.0 }
 0x2bf   :  { %v1033_v0 = vmax.f32 %v1001_v62, 0.0  ;;  %v1523_v1 = vpop.f32.mrb[52].mxu1 }
 0x2c0   :  { %v1524_v2 = vpop.f32.mrb[53].mxu1 }
 0x2c1   :  { %v1525_v3 = vadd.f32 %v1524_v2, %v1523_v1  ;;  %v1526_v4 = vpop.f32.mrb[54].mxu1  ;;  %v1052_v5 = vpack.c.bf16 %v1033_v0, %v1032_v63 }
 0x2c2   :  { %v1527_v6 = vpop.f32.mrb[55].mxu1 }
 0x2c3   :  { %v1002_v7 = vadd.f32 %v1525_v3, %v1982_v50  ;;  %v1528_v8 = vadd.f32 %v1527_v6, %v1526_v4  ;;  %1653 = vmatprep.mubr.bf16.mxu0 %v1052_v5 }
 0x2c5   :  { %v1003_v9 = vadd.f32 %v1528_v8, %v1982_v50  ;;  %v1034_v10 = vmax.f32 %v1002_v7, 0.0 }
 0x2c7   :  { %v1035_v11 = vmax.f32 %v1003_v9, 0.0  ;;  %v1529_v12 = vpop.f32.mrb[56].mxu1 }
 0x2c8   :  { %v1530_v13 = vpop.f32.mrb[57].mxu1 }
 0x2c9   :  { %v1531_v14 = vadd.f32 %v1530_v13, %v1529_v12  ;;  %v1532_v15 = vpop.f32.mrb[58].mxu1  ;;  %v1053_v16 = vpack.c.bf16 %v1035_v11, %v1034_v10 }
 0x2ca   :  { %v1533_v17 = vpop.f32.mrb[59].mxu1 }
 0x2cb   :  { %v1004_v18 = vadd.f32 %v1531_v14, %v1982_v50  ;;  %v1534_v19 = vadd.f32 %v1533_v17, %v1532_v15  ;;  %1654 = vmatmul.mubr.bf16.gmra.mrb[56].mxu0 %v1053_v16 }
 0x2cd   :  { %v1005_v20 = vadd.f32 %v1534_v19, %v1982_v50  ;;  %v1036_v21 = vmax.f32 %v1004_v18, 0.0 }
 0x2cf   :  { %v1037_v22 = vmax.f32 %v1005_v20, 0.0  ;;  %v1535_v23 = vpop.f32.mrb[60].mxu1 }
 0x2d0   :  { %v1536_v24 = vpop.f32.mrb[61].mxu1 }
 0x2d1   :  { %v1537_v25 = vadd.f32 %v1536_v24, %v1535_v23  ;;  %v1538_v26 = vpop.f32.mrb[62].mxu1  ;;  %v1054_v27 = vpack.c.bf16 %v1037_v22, %v1036_v21 }
 0x2d2   :  { %v1539_v28 = vpop.f32.mrb[63].mxu1 }
 0x2d3   :  { %v1006_v29 = vadd.f32 %v1537_v25, %v1982_v50  ;;  %v1540_v30 = vadd.f32 %v1539_v28, %v1538_v26  ;;  %1657 = vmatprep.mubr.bf16.mxu0 %v1054_v27 }
 0x2d5   :  { %v1007_v31 = vadd.f32 %v1540_v30, %v1982_v50  ;;  %v1038_v32 = vmax.f32 %v1006_v29, 0.0 }
 0x2d7   :  { %v1039_v33 = vmax.f32 %v1007_v31, 0.0 }
 0x2d9   :  { %v1055_v34 = vpack.c.bf16 %v1039_v33, %v1038_v32 }
 0x2db   :  { %1658 = vmatmul.mubr.bf16.gmra.mrb[60].mxu0 %v1055_v34 }
 0x33e   :  { %v1631_v36 = vpop.f32.mrb[32].mxu0 }
 0x33f   :  { %v1170_v37 = vadd.f32 %v1631_v36, %v2019_v35  ;;  %v1161_v38 = vpop.f32.mrb[33].mxu0 }
 0x340   :  { %v1162_v39 = vadd.f32 %v2019_v35, %v1161_v38  ;;  %v1632_v40 = vpop.f32.mrb[34].mxu0 }
 0x341   :  { %1290 = vst [vmem:[#allocation11 + $0x10] sm:$0xff] %v1170_v37  ;;  %v1173_v41 = vadd.f32 %v1632_v40, %v2019_v35  ;;  %v1164_v50 = vpop.f32.mrb[35].mxu0 }
 0x342   :  { %1288 = vst [vmem:[#allocation11] sm:$0xff] %v1162_v39  ;;  %v1165_v42 = vadd.f32 %v2019_v35, %v1164_v50 }
 0x343   :  { %1291 = vst [vmem:[#allocation11 + $0x18] sm:$0xff] %v1173_v41 }
 0x344   :  { %1289 = vst [vmem:[#allocation11 + $0x8] sm:$0xff] %v1165_v42 }
 0x34e   :  { %v1635_v43 = vpop.f32.mrb[36].mxu0 }
 0x34f   :  { %v1186_v44 = vadd.f32 %v1635_v43, %v2019_v35  ;;  %v1177_v45 = vpop.f32.mrb[37].mxu0 }
 0x350   :  { %v1178_v46 = vadd.f32 %v2019_v35, %v1177_v45  ;;  %v1636_v47 = vpop.f32.mrb[38].mxu0 }
 0x351   :  { %1294 = vst [vmem:[#allocation11 + $0x30] sm:$0xff] %v1186_v44  ;;  %v1189_v48 = vadd.f32 %v1636_v47, %v2019_v35  ;;  %v1180_v49 = vpop.f32.mrb[39].mxu0 }
 0x352   :  { %1292 = vst [vmem:[#allocation11 + $0x20] sm:$0xff] %v1178_v46  ;;  %v1181_v51 = vadd.f32 %v2019_v35, %v1180_v49 }
 0x353   :  { %1295 = vst [vmem:[#allocation11 + $0x38] sm:$0xff] %v1189_v48 }
 0x354   :  { %1293 = vst [vmem:[#allocation11 + $0x28] sm:$0xff] %v1181_v51 }
 0x35e   :  { %v1639_v52 = vpop.f32.mrb[40].mxu0 }
 0x35f   :  { %v1202_v53 = vadd.f32 %v1639_v52, %v2019_v35  ;;  %v1193_v54 = vpop.f32.mrb[41].mxu0 }
 0x360   :  { %v1194_v55 = vadd.f32 %v2019_v35, %v1193_v54  ;;  %v1640_v56 = vpop.f32.mrb[42].mxu0 }
 0x361   :  { %1298 = vst [vmem:[#allocation11 + $0x50] sm:$0xff] %v1202_v53  ;;  %v1205_v57 = vadd.f32 %v1640_v56, %v2019_v35  ;;  %v1196_v58 = vpop.f32.mrb[43].mxu0 }
 0x362   :  { %1296 = vst [vmem:[#allocation11 + $0x40] sm:$0xff] %v1194_v55  ;;  %v1197_v59 = vadd.f32 %v2019_v35, %v1196_v58 }
 0x363   :  { %1299 = vst [vmem:[#allocation11 + $0x58] sm:$0xff] %v1205_v57 }
 0x364   :  { %1297 = vst [vmem:[#allocation11 + $0x48] sm:$0xff] %v1197_v59 }
 0x36e   :  { %v1643_v60 = vpop.f32.mrb[44].mxu0 }
 0x36f   :  { %v1218_v61 = vadd.f32 %v1643_v60, %v2019_v35  ;;  %v1209_v62 = vpop.f32.mrb[45].mxu0 }
 0x370   :  { %v1210_v63 = vadd.f32 %v2019_v35, %v1209_v62  ;;  %v1644_v0 = vpop.f32.mrb[46].mxu0 }
 0x371   :  { %1302 = vst [vmem:[#allocation11 + $0x70] sm:$0xff] %v1218_v61  ;;  %v1221_v1 = vadd.f32 %v1644_v0, %v2019_v35  ;;  %v1212_v2 = vpop.f32.mrb[47].mxu0 }
 0x372   :  { %1300 = vst [vmem:[#allocation11 + $0x60] sm:$0xff] %v1210_v63  ;;  %v1213_v3 = vadd.f32 %v2019_v35, %v1212_v2 }
 0x373   :  { %1303 = vst [vmem:[#allocation11 + $0x78] sm:$0xff] %v1221_v1 }
 0x374   :  { %1301 = vst [vmem:[#allocation11 + $0x68] sm:$0xff] %v1213_v3 }
 0x37e   :  { %v1647_v4 = vpop.f32.mrb[48].mxu0 }
 0x37f   :  { %v1234_v5 = vadd.f32 %v1647_v4, %v2019_v35  ;;  %v1225_v6 = vpop.f32.mrb[49].mxu0 }
 0x380   :  { %v1226_v7 = vadd.f32 %v2019_v35, %v1225_v6  ;;  %v1648_v8 = vpop.f32.mrb[50].mxu0 }
 0x381   :  { %1306 = vst [vmem:[#allocation11 + $0x90] sm:$0xff] %v1234_v5  ;;  %v1237_v9 = vadd.f32 %v1648_v8, %v2019_v35  ;;  %v1228_v10 = vpop.f32.mrb[51].mxu0 }
 0x382   :  { %1304 = vst [vmem:[#allocation11 + $0x80] sm:$0xff] %v1226_v7  ;;  %v1229_v11 = vadd.f32 %v2019_v35, %v1228_v10 }
 0x383   :  { %1307 = vst [vmem:[#allocation11 + $0x98] sm:$0xff] %v1237_v9 }
 0x384   :  { %1305 = vst [vmem:[#allocation11 + $0x88] sm:$0xff] %v1229_v11 }
 0x38e   :  { %v1651_v12 = vpop.f32.mrb[52].mxu0 }
 0x38f   :  { %v1250_v13 = vadd.f32 %v1651_v12, %v2019_v35  ;;  %v1241_v14 = vpop.f32.mrb[53].mxu0 }
 0x390   :  { %v1242_v15 = vadd.f32 %v2019_v35, %v1241_v14  ;;  %v1652_v16 = vpop.f32.mrb[54].mxu0 }
 0x391   :  { %1310 = vst [vmem:[#allocation11 + $0xb0] sm:$0xff] %v1250_v13  ;;  %v1253_v17 = vadd.f32 %v1652_v16, %v2019_v35  ;;  %v1244_v18 = vpop.f32.mrb[55].mxu0 }
 0x392   :  { %1308 = vst [vmem:[#allocation11 + $0xa0] sm:$0xff] %v1242_v15  ;;  %v1245_v19 = vadd.f32 %v2019_v35, %v1244_v18 }
 0x393   :  { %1311 = vst [vmem:[#allocation11 + $0xb8] sm:$0xff] %v1253_v17 }
 0x394   :  { %1309 = vst [vmem:[#allocation11 + $0xa8] sm:$0xff] %v1245_v19 }
 0x39e   :  { %v1655_v20 = vpop.f32.mrb[56].mxu0 }
 0x39f   :  { %v1266_v21 = vadd.f32 %v1655_v20, %v2019_v35  ;;  %v1257_v22 = vpop.f32.mrb[57].mxu0 }
 0x3a0   :  { %v1258_v23 = vadd.f32 %v2019_v35, %v1257_v22  ;;  %v1656_v24 = vpop.f32.mrb[58].mxu0 }
 0x3a1   :  { %1314 = vst [vmem:[#allocation11 + $0xd0] sm:$0xff] %v1266_v21  ;;  %v1269_v25 = vadd.f32 %v1656_v24, %v2019_v35  ;;  %v1260_v26 = vpop.f32.mrb[59].mxu0 }
 0x3a2   :  { %1312 = vst [vmem:[#allocation11 + $0xc0] sm:$0xff] %v1258_v23  ;;  %v1261_v27 = vadd.f32 %v2019_v35, %v1260_v26 }
 0x3a3   :  { %1315 = vst [vmem:[#allocation11 + $0xd8] sm:$0xff] %v1269_v25 }
 0x3a4   :  { %1313 = vst [vmem:[#allocation11 + $0xc8] sm:$0xff] %v1261_v27 }
 0x3ae   :  { %v1659_v28 = vpop.f32.mrb[60].mxu0 }
 0x3af   :  { %v1282_v29 = vadd.f32 %v1659_v28, %v2019_v35  ;;  %v1273_v30 = vpop.f32.mrb[61].mxu0 }
 0x3b0   :  { %v1274_v31 = vadd.f32 %v2019_v35, %v1273_v30  ;;  %v1660_v32 = vpop.f32.mrb[62].mxu0 }
 0x3b1   :  { %1318 = vst [vmem:[#allocation11 + $0xf0] sm:$0xff] %v1282_v29  ;;  %v1285_v33 = vadd.f32 %v1660_v32, %v2019_v35  ;;  %v1276_v34 = vpop.f32.mrb[63].mxu0 }
 0x3b2   :  { %1316 = vst [vmem:[#allocation11 + $0xe0] sm:$0xff] %v1274_v31  ;;  %v1277_v36 = vadd.f32 %v2019_v35, %v1276_v34 }
 0x3b3   :  { %1319 = vst [vmem:[#allocation11 + $0xf8] sm:$0xff] %v1285_v33 }
 0x3b4   :  { %1317 = vst [vmem:[#allocation11 + $0xe8] sm:$0xff] %v1277_v36 }
 0x3b5   :  { %1849 = shalt.err (!%p1846_p8)
}
 0x3b6   :  { %s1850_s29 = scalar_lea.hbm %s2074_s6, 4096 }
 0x3b7   :  { %p1851_p9 = scmp.ne.s32.totalorder %s2074_s6, %s1850_s29  ;;  %p1854_p10 = scmp.lt.u32.totalorder %s1850_s29, %s2074_s6 }
 0x3b9   :  { %p1856_p11 = pnand %p1854_p10, %p1851_p9 }
 0x3bb   :  { %1859 = shalt.err (!%p1856_p11)
}
 0x3bc   :  { %1331 = dma.vmem_to_hbm [thread:$0]  %s1326_s25, 4096, %s2074_s6, [#allocation5], %s1872_s1, %s1872_s1, %s1873_s21  }
 0x3bd   :  { %1866 = dma.done.wait [#allocation5], 4096  }
 0x3be   :  { %1867 = vsyncadd [#allocation5], 4294963200 }
 0x3bf   :  { %1335 = vsyncpa [#allocation4], 1 }
 0x3c0   :  { %1336 = vsyncpa [#allocation7], 1 }
 0x3c1   :  { %1337 = vsyncpa [#allocation10], 1 }
 0x3c2   :  { %1338 = vsyncpa [#allocation5], 1 }

</bundles_post_ra>
